<compile_context>
chip_gen: v7x
topology: tpu7x:2x2x1
jax: 0.10.0
libtpu: 0.0.40
codegen_flags: <defaults>
</compile_context>

<pallas_src>
import jax
import jax.numpy as jnp
from jax.experimental import pallas as pl
from jax.experimental.pallas import tpu as pltpu


def evdev_kernel(obs_ref, idx_ref, w_ref, b_ref, mat_ref, st_ref, out_ref):
    obs = obs_ref[...]                                     # (BT, F)  compute dtype
    idx = idx_ref[...]                                     # (BT, 1)  int32
    mat = mat_ref[...]                                     # (n_rows_pad, R)

    bt = obs.shape[0]
    n_rows = mat.shape[0]

    # Fused row gather: one_hot(idx) @ [ev_mat | dev_mat] on the MXU.
    row_ids = jax.lax.broadcasted_iota(jnp.int32, (bt, n_rows), 1)
    onehot = (row_ids == idx).astype(mat.dtype)            # (BT, n_rows) 0/1
    sel = jnp.dot(onehot, mat,
                  preferred_element_type=jnp.float32)      # (BT, R) f32

    # Single fused linear for both heads, f32 accumulation.
    lin = jnp.dot(obs, w_ref[...],
                  preferred_element_type=jnp.float32)      # (BT, R) f32

    # Bias folded in as a broadcast-add (VPU, hidden under the MXU): no extra
    # matmul and no extra (R, 2) operand for the bias term.
    ls = (lin + b_ref[...]) * sel                          # (BT, R) f32

    # Per-head rank reduction, emitted lane-dense as (2, BT):
    #   out[h, b] = sum_r S[h, r] * ls[b, r]
    out_ref[...] = jax.lax.dot_general(
        st_ref[...], ls,
        dimension_numbers=(((1,), (1,)), ((), ())),
        preferred_element_type=jnp.float32)                # (2, BT) f32


def pack_params(params, compute_dtype=jnp.float32):
    """One-time packing of module parameters (off the forward path).

    compute_dtype=jnp.bfloat16 halves obs/weight HBM traffic and doubles the
    MXU rate (accumulation stays f32).  Default f32 matches the module's
    explicit autocast(enabled=False) semantics.
    """
    w_ev, b_ev, w_dev, b_dev, ev_mat, dev_mat = params
    evr = w_ev.shape[1]
    r = evr + w_dev.shape[1]

    w_c = jnp.concatenate([w_ev, w_dev], axis=1).astype(compute_dtype)   # (F, R)

    mat_c = jnp.concatenate([ev_mat, dev_mat], axis=1)                   # (n_rows, R)
    n_pad = (-mat_c.shape[0]) % 8       # sublane-align the gather contraction
    if n_pad:
        mat_c = jnp.pad(mat_c, ((0, n_pad), (0, 0)))       # padded rows never selected
    mat_c = mat_c.astype(compute_dtype)

    b_c = jnp.concatenate([b_ev, b_dev], axis=0).reshape(1, r)           # (1, R) f32
    b_c = b_c.astype(jnp.float32)

    is_dev = (jnp.arange(r) >= evr).astype(jnp.float32)
    st = jnp.stack([1.0 - is_dev, is_dev], axis=0)                       # (2, R) 0/1
    return (w_c, mat_c, b_c, st)


def _choose_batch_tile(batch):
    """Batch tile BT.

    Small B: one full-array tile (block == array shape lifts (8,128)
    alignment constraints; nothing to amortize).  Large B: tiles that are a
    multiple of 128 (unmasked lane-dense (2, BT) stores), at least 2 grid
    steps so v7x's two TensorCores both get work, capped at 2048 rows so
    double-buffered obs tiles stay far below v7x's 64 MiB VMEM
    (BT=2048, F=32, f32 -> 256 KiB per buffer).
    """
    if batch <= 256:
        return batch
    return min(2048, max(128, (pl.cdiv(batch, 2) // 128) * 128))


def evdev_forward(obs, idx, packed):
    """obs: (B, in_feat), idx: (B,) or (B,1) int. Returns (2, B) float32."""
    w_c, mat_c, b_c, st = packed
    f, r = w_c.shape
    n_rows_pad = mat_c.shape[0]
    b = obs.shape[0]

    # Trace-time no-ops when the caller already passes prepared inputs
    # (obs in the packed compute dtype, idx as (B, 1) int32).
    if obs.dtype != w_c.dtype:
        obs = obs.astype(w_c.dtype)
    if idx.ndim == 1:
        idx = idx[:, None]
    if idx.dtype != jnp.int32:
        idx = idx.astype(jnp.int32)

    bt = _choose_batch_tile(b)
    grid = (pl.cdiv(b, bt),)

    return pl.pallas_call(
        evdev_kernel,
        out_shape=jax.ShapeDtypeStruct((2, b), jnp.float32),
        grid_spec=pltpu.PrefetchScalarGridSpec(
            num_scalar_prefetch=0,
            grid=grid,
            in_specs=[
                pl.BlockSpec((bt, f), lambda i: (i, 0)),          # obs
                pl.BlockSpec((bt, 1), lambda i: (i, 0)),          # idx
                pl.BlockSpec((f, r), lambda i: (0, 0)),           # [W_ev | W_dev]
                pl.BlockSpec((1, r), lambda i: (0, 0)),           # [b_ev | b_dev]
                pl.BlockSpec((n_rows_pad, r), lambda i: (0, 0)),  # [ev_mat | dev_mat]
                pl.BlockSpec((2, r), lambda i: (0, 0)),           # head selector S^T
            ],
            out_specs=pl.BlockSpec((2, bt), lambda i: (0, i)),    # lane-dense (2, B)
        ),
        compiler_params=pltpu.CompilerParams(
            dimension_semantics=("parallel",),
            vmem_limit_bytes=32 * 1024 * 1024),
    )(obs, idx, w_c, b_c, mat_c, st)


# ----------------------------- test scaffolding ------------------------------

def init_params(key, in_feat, ev_rank, dev_rank, n_rows):
    """Deterministic synthetic parameters matching the module's shapes."""
    ks = jax.random.split(key, 6)
    # nn.Linear(in_feat, rank): weight (rank, in_feat) -> stored transposed.
    w_ev = jax.random.normal(ks[0], (in_feat, ev_rank), jnp.float32) * 0.1
    b_ev = jax.random.normal(ks[1], (ev_rank,), jnp.float32) * 0.1
    w_dev = jax.random.normal(ks[2], (in_feat, dev_rank), jnp.float32) * 0.1
    b_dev = jax.random.normal(ks[3], (dev_rank,), jnp.float32) * 0.1
    # kEvMatrix / kDevMatrix * 1e-5, sliced to [:, :rank].
    ev_mat = jax.random.normal(ks[4], (n_rows, ev_rank), jnp.float32) * 1e-5
    dev_mat = jax.random.normal(ks[5], (n_rows, dev_rank), jnp.float32) * 1e-5
    return (w_ev, b_ev, w_dev, b_dev, ev_mat, dev_mat)


def evdev_reference(obs, idx, params):
    w_ev, b_ev, w_dev, b_dev, ev_mat, dev_mat = params
    obs = obs.astype(jnp.float32)
    ev = ((obs @ w_ev + b_ev) * ev_mat[idx]).sum(axis=1)
    dev = ((obs @ w_dev + b_dev) * dev_mat[idx]).sum(axis=1)
    return jnp.stack([ev, dev])


def _quantize_params_bf16(params):
    w_ev, b_ev, w_dev, b_dev, ev_mat, dev_mat = params
    q = lambda x: x.astype(jnp.bfloat16).astype(jnp.float32)
    return (q(w_ev), b_ev, q(w_dev), b_dev, q(ev_mat), q(dev_mat))


if __name__ == "__main__":
    B, in_feat, ev_rank, dev_rank, n_rows = 8, 32, 16, 16, 12

    key = jax.random.PRNGKey(0)
    k_obs, k_idx, k_par = jax.random.split(key, 3)

    obs = jax.random.normal(k_obs, (B, in_feat), jnp.float32)
    idx = jax.random.randint(k_idx, (B,), 0, n_rows, jnp.int32)
    params = init_params(k_par, in_feat, ev_rank, dev_rank, n_rows)

    fwd = jax.jit(evdev_forward)

    # ---- default f32 path (matches the module's autocast(enabled=False)) ----
    packed_f32 = pack_params(params, compute_dtype=jnp.float32)
    out_f32 = jax.block_until_ready(fwd(obs, idx, packed_f32))
    ref = evdev_reference(obs, idx, params)
    assert out_f32.shape == (2, B), out_f32.shape
    assert jnp.allclose(out_f32, ref, atol=1e-6, rtol=1e-4), float(
        jnp.max(jnp.abs(out_f32 - ref)))

    # ---- optional bf16 MXU-operand path (f32 accumulation) ----
    packed_bf16 = pack_params(params, compute_dtype=jnp.bfloat16)
    out_bf16 = jax.block_until_ready(fwd(obs, idx, packed_bf16))
    ref_bf16 = evdev_reference(
        obs.astype(jnp.bfloat16).astype(jnp.float32), idx,
        _quantize_params_bf16(params))
    assert out_bf16.shape == (2, B), out_bf16.shape
    assert jnp.allclose(out_bf16, ref_bf16, atol=1e-6, rtol=1e-3), float(
        jnp.max(jnp.abs(out_bf16 - ref_bf16)))

    print("KERNEL_OK")
</pallas_src>

<mosaic_0001>
module attributes {stable_mosaic.version = 11 : i64} {
  func.func @evdev_kernel(%arg0: i32, %arg1: memref<8x32xf32, #tpu.memory_space<vmem>>, %arg2: memref<8x1xi32, #tpu.memory_space<vmem>>, %arg3: memref<32x32xf32, #tpu.memory_space<vmem>>, %arg4: memref<1x32xf32, #tpu.memory_space<vmem>>, %arg5: memref<16x32xf32, #tpu.memory_space<vmem>>, %arg6: memref<2x32xf32, #tpu.memory_space<vmem>>, %arg7: memref<2x8xf32, #tpu.memory_space<vmem>>) attributes {dimension_semantics = [#tpu.dimension_semantics<parallel>], iteration_bounds = array<i64: 1>, scalar_prefetch = 0 : i64, scratch_operands = 0 : i64, tpu.core_type = #tpu.core_type<tc>, window_params = [{transform_indices = @transform_0, window_bounds = array<i64: 8, 32>}, {transform_indices = @transform_1, window_bounds = array<i64: 8, 1>}, {pipeline_mode = #tpu.pipeline_mode<synchronous>, transform_indices = @transform_2, window_bounds = array<i64: 32, 32>}, {pipeline_mode = #tpu.pipeline_mode<synchronous>, transform_indices = @transform_3, window_bounds = array<i64: 1, 32>}, {pipeline_mode = #tpu.pipeline_mode<synchronous>, transform_indices = @transform_4, window_bounds = array<i64: 16, 32>}, {pipeline_mode = #tpu.pipeline_mode<synchronous>, transform_indices = @transform_5, window_bounds = array<i64: 2, 32>}, {transform_indices = @transform_6, window_bounds = array<i64: 2, 8>}]} {
    %c0 = arith.constant 0 : index
    %c0_0 = arith.constant 0 : index
    %0 = vector.load %arg1[%c0, %c0_0] : memref<8x32xf32, #tpu.memory_space<vmem>>, vector<8x32xf32>
    %c0_1 = arith.constant 0 : index
    %c0_2 = arith.constant 0 : index
    %1 = vector.load %arg2[%c0_1, %c0_2] : memref<8x1xi32, #tpu.memory_space<vmem>>, vector<8x1xi32>
    %c0_3 = arith.constant 0 : index
    %c0_4 = arith.constant 0 : index
    %2 = vector.load %arg5[%c0_3, %c0_4] : memref<16x32xf32, #tpu.memory_space<vmem>>, vector<16x32xf32>
    %3 = tpu.iota {dimensions = array<i32: 1>} : vector<8x16xi32>
    %4 = vector.broadcast %1 : vector<8x1xi32> to vector<8x16xi32>
    %5 = arith.cmpi eq, %3, %4 : vector<8x16xi32>
    %6 = arith.extui %5 : vector<8x16xi1> to vector<8x16xi32>
    %7 = arith.sitofp %6 : vector<8x16xi32> to vector<8x16xf32>
    %cst = arith.constant dense<0.000000e+00> : vector<8x32xf32>
    %8 = tpu.matmul %7, %2, %cst {dimension_numbers = #tpu.dot_dimension_numbers<[1], [0], [0], [1], [0, 0, 1, 1], [], []>} : vector<8x16xf32>, vector<16x32xf32>, vector<8x32xf32> -> vector<8x32xf32>
    %c0_5 = arith.constant 0 : index
    %c0_6 = arith.constant 0 : index
    %9 = vector.load %arg3[%c0_5, %c0_6] : memref<32x32xf32, #tpu.memory_space<vmem>>, vector<32x32xf32>
    %cst_7 = arith.constant dense<0.000000e+00> : vector<8x32xf32>
    %10 = tpu.matmul %0, %9, %cst_7 {dimension_numbers = #tpu.dot_dimension_numbers<[1], [0], [0], [1], [0, 0, 1, 1], [], []>} : vector<8x32xf32>, vector<32x32xf32>, vector<8x32xf32> -> vector<8x32xf32>
    %c0_8 = arith.constant 0 : index
    %c0_9 = arith.constant 0 : index
    %11 = vector.load %arg4[%c0_8, %c0_9] : memref<1x32xf32, #tpu.memory_space<vmem>>, vector<1x32xf32>
    %12 = vector.broadcast %11 : vector<1x32xf32> to vector<8x32xf32>
    %13 = arith.addf %10, %12 : vector<8x32xf32>
    %14 = arith.mulf %13, %8 : vector<8x32xf32>
    %c0_10 = arith.constant 0 : index
    %c0_11 = arith.constant 0 : index
    %15 = vector.load %arg6[%c0_10, %c0_11] : memref<2x32xf32, #tpu.memory_space<vmem>>, vector<2x32xf32>
    %cst_12 = arith.constant dense<0.000000e+00> : vector<2x8xf32>
    %16 = tpu.matmul %15, %14, %cst_12 {dimension_numbers = #tpu.dot_dimension_numbers<[1], [1], [0], [0], [0, 0, 1, 0], [], []>} : vector<2x32xf32>, vector<8x32xf32>, vector<2x8xf32> -> vector<2x8xf32>
    %c0_13 = arith.constant 0 : index
    %c0_14 = arith.constant 0 : index
    %17 = vector.load %arg7[%c0_13, %c0_14] : memref<2x8xf32, #tpu.memory_space<vmem>>, vector<2x8xf32>
    tpu.vector_store %arg7[%c0_13, %c0_14], %16 {strides = array<i32>} : memref<2x8xf32, #tpu.memory_space<vmem>>, vector<2x8xf32>,
    return
  }
  func.func @transform_0(%arg0: i32) -> (i32, i32) {
    %c0_i32 = arith.constant 0 : i32
    %c0_i32_0 = arith.constant 0 : i32
    return %arg0, %c0_i32 : i32, i32
  }
  func.func @transform_1(%arg0: i32) -> (i32, i32) {
    %c0_i32 = arith.constant 0 : i32
    %c0_i32_0 = arith.constant 0 : i32
    return %arg0, %c0_i32 : i32, i32
  }
  func.func @transform_2(%arg0: i32) -> (i32, i32) {
    %c0_i32 = arith.constant 0 : i32
    %c0_i32_0 = arith.constant 0 : i32
    %c0_i32_1 = arith.constant 0 : i32
    return %c0_i32, %c0_i32_0 : i32, i32
  }
  func.func @transform_3(%arg0: i32) -> (i32, i32) {
    %c0_i32 = arith.constant 0 : i32
    %c0_i32_0 = arith.constant 0 : i32
    %c0_i32_1 = arith.constant 0 : i32
    return %c0_i32, %c0_i32_0 : i32, i32
  }
  func.func @transform_4(%arg0: i32) -> (i32, i32) {
    %c0_i32 = arith.constant 0 : i32
    %c0_i32_0 = arith.constant 0 : i32
    %c0_i32_1 = arith.constant 0 : i32
    return %c0_i32, %c0_i32_0 : i32, i32
  }
  func.func @transform_5(%arg0: i32) -> (i32, i32) {
    %c0_i32 = arith.constant 0 : i32
    %c0_i32_0 = arith.constant 0 : i32
    %c0_i32_1 = arith.constant 0 : i32
    return %c0_i32, %c0_i32_0 : i32, i32
  }
  func.func @transform_6(%arg0: i32) -> (i32, i32) {
    %c0_i32 = arith.constant 0 : i32
    %c0_i32_0 = arith.constant 0 : i32
    return %c0_i32, %arg0 : i32, i32
  }
}

</mosaic_0001>

<bundles_post_ra>
// kernel: evdev_forward.1
= control target key start
LH: loop header
LB: loop body
LE: loop exit
PB: predicated region body
PF: predicated region fallthrough
CT: control target
= control target key end

     0   :  { %11 = vsyncpa [#allocation3], 0  ;;  %s500_s0 = inlined_call_operand.vmem [shape: f32[8,32], index: 0, kind: input, shape index: {}]   ;;  %s501_s1 = inlined_call_operand.vmem [shape: s32[8,1], index: 1, kind: input, shape index: {}]   ;;  %s502_s2 = inlined_call_operand.hbm [shape: f32[32,32], index: 2, kind: input, shape index: {}]   ;;  %s503_s3 = inlined_call_operand.vmem [shape: f32[1,32], index: 3, kind: input, shape index: {}]   ;;  %s504_s4 = inlined_call_operand.vmem [shape: f32[16,32], index: 4, kind: input, shape index: {}]   ;;  %s505_s5 = inlined_call_operand.vmem [shape: f32[2,32], index: 5, kind: input, shape index: {}]   ;;  %s506_s6 = inlined_call_operand.hbm [shape: f32[2,8], index: 6, kind: output, shape index: {}]  }
   0x1   :  { %12 = vsyncpa [#allocation4], 0  ;;  %s409_s21 = smov [#allocation2]   ;;  %s361_s25 = scalar_lea.hbm %s502_s2, 512 }
   0x2   :  { %s22_s22 = sshll.u32 %s409_s21, 4  ;;  %p362_p0 = scmp.ne.s32.totalorder %s502_s2, %s361_s25  ;;  %s23_s22 = int_to_ptr.vmem [resolvable:$true] %s22_s22 }
   0x3   :  { %p365_p1 = scmp.lt.u32.totalorder %s361_s25, %s502_s2 }
   0x5   :  { %p367_p2 = pnand %p365_p1, %p362_p0 }
   0x7   :  { %370 = shalt.err (!%p367_p2)
}
   0x8   :  { %s371_s30 = scalar_lea.vmem %s23_s22, 512  ;;  %p376_p4 = scmp.lt.s32.totalorder %s23_s22, %s23_s22 }
   0x9   :  { %p372_p3 = scmp.ne.s32.totalorder %s23_s22, %s371_s30  ;;  %p377_p5 = scmp.lt.s32.totalorder %s371_s30, %s371_s30 }
   0xb   :  { %p378_p6 = por %p377_p5, %p376_p4 }
   0xd   :  { %p379_p7 = pnand %p378_p6, %p372_p3 }
   0xf   :  { %382 = shalt.err (!%p379_p7)
}
  0x10   :  { %s410_s7 = smov 128   ;;  %s411_s8 = smov 8  }
  0x11   :  { %28 = dma.hbm_to_vmem [thread:$0]  %s502_s2, 512, %s23_s22, [#allocation3], %s410_s7, %s410_s7, %s411_s8  }
  0x12   :  { %405 = dma.done.wait [#allocation3], 512  }
  0x13   :  { %406 = vsyncadd [#allocation3], 4294966784  ;;  %v412_v0 = vmov 0   ;;  %v413_v1 = vmov 0.0|0.0   ;;  %vm414_vm0 = vmmov 0   ;;  %v415_v2 = vmov 0.0  }
  0x14   :  { %360 = vset.pattern.permute.xlu0 %v412_v0  ;;  %346 = vmatprep.subr.bf16.mxu1 %v413_v1  ;;  %v39_v3 = vld [vmem:[%s501_s1] sm:$0xff]  ;;  %v125_v5 = vld [vmem:[#allocation2 + $0x8] sm:$0xff]  ;;  %v126_v7 = vld [vmem:[#allocation2 + $0x10] sm:$0xff]  ;;  %vm135_vm1 = vcmask 261120   ;;  %v42_v14 = vlaneseq  ;;  %vm50_vm2 = vcmask 130048   ;;  %s416_s19 = smov [#allocation5]  }
  0x15   :  { %343 = vmatprep.subr.bf16.mxu0 %v413_v1  ;;  %335 = vmatprep.mubr.msk.f32.mxu1 %vm414_vm0, %v415_v2  ;;  %v124_v4 = vld [vmem:[#allocation2] sm:$0xff]  ;;  %v127_v8 = vld [vmem:[#allocation2 + $0x18] sm:$0xff]  ;;  %v41_v10 = vld [vmem:[%s504_s4 + $0x8] sm:$0xff]  ;;  %s295_s20 = sshll.u32 %s416_s19, 4  ;;  %vm287_vm4 = vcmask 58368   ;;  %s296_s20 = int_to_ptr.vmem [resolvable:$true] %s295_s20 }
  0x16   :  { %324 = vmatprep.mubr.msk.f32.mxu0 %vm414_vm0, %v415_v2  ;;  %45 = vperm.xlu0 %360, %v39_v3   ;;  %v347_v6 = vpack.c.bf16 %v125_v5, %v124_v4  ;;  %v40_v9 = vld [vmem:[%s504_s4] sm:$0xff]  ;;  %v350_v11 = vpack.c.bf16 %v127_v8, %v126_v7  ;;  %v43_v15 = vand.u32 127, %v42_v14  ;;  %p388_p9 = scmp.lt.s32.totalorder %s296_s20, %s296_s20 }
  0x17   :  { %v344_v12 = vpack.c.bf16 %v41_v10, %v40_v9  ;;  %v38_v13 = vld [vmem:[%s500_s0] sm:$0xff] }
  0x18   :  { %348 = vmatpush3.bf16.msra.mxu1 %v347_v6  ;;  %v306_v20 = vld [vmem:[%s503_s3] ss:$0 sm:$0xff]  ;;  %s383_s3 = scalar_lea.vmem %s296_s20, 32 }
  0x19   :  { %349 = vmatprep.subr.bf16.mxu1 %v413_v1  ;;  %345 = vmatpush3.bf16.msra.mxu0 %v344_v12  ;;  %v210_v25 = vld [vmem:[%s505_s5] sm:$0x3]  ;;  %p384_p8 = scmp.ne.s32.totalorder %s296_s20, %s383_s3  ;;  %p389_p10 = scmp.lt.s32.totalorder %s383_s3, %s383_s3 }
  0x1a   :  { %338 = vmatprep.subr.mxu0 %v415_v2 }
  0x1b   :  { %p390_p11 = por %p389_p10, %p388_p9 }
  0x1c   :  { %351 = vmatpush3.bf16.msra.mxu1 %v350_v11 }
  0x1d   :  { %p391_p12 = pnand %p390_p11, %p384_p8 }
  0x1f   :  { %336 = vmatmul.mubr.msk.f32.vlgmr.msra.gmra.mrb[0].mxu1 %vm135_vm1, %v38_v13 }
  0x95   :  { %v46_v16 = vpop.permute.xlu0 %45 }
  0x96   :  { %vm47_vm3 = vcmp.eq.s32.totalorder %v43_v15, %v46_v16 }
  0x97   :  { %v304_v17 = vsel %vm47_vm3, 1.0, %v415_v2 }
  0x98   :  { %325 = vmatmul.mubr.msk.f32.vlgmr.msra.gmra.mrb[0].mxu0 %vm50_vm2, %v304_v17 }
  0x99   :  { %340 = vmatprep.mubr.msk.f32.mxu0 %vm414_vm0, %v415_v2 }
  0xf2   :  { %v205_v18 = vpop.f32.mrb[0].mxu1 }
  0xf3   :  { %v337_v19 = vpop.f32.mrb[1].mxu1  ;;  %v206_v21 = vadd.f32 %v306_v20, %v205_v18 }
 0x16b   :  { %v120_v22 = vpop.f32.mrb[0].mxu0 }
 0x16c   :  { %v209_v23 = vmul.f32 %v206_v21, %v120_v22  ;;  %v326_v24 = vpop.f32.mrb[1].mxu0 }
 0x16e   :  { %339 = vmatpush3.xpose.msk.msra.mxu0 %vm135_vm1, %v209_v23 }
 0x171   :  { %341 = vmatmul.mubr.msk.f32.vlgmr.msra.gmra.mrb[2].mxu0 %vm135_vm1, %v210_v25 }
 0x244   :  { %v283_v26 = vpop.f32.mrb[2].mxu0 }
 0x245   :  { %v342_v27 = vpop.f32.mrb[3].mxu0  ;;  %288 = vst.msk [vmem:[#allocation5] sm:$0x3] %vm287_vm4, %v283_v26 }
 0x246   :  { %394 = shalt.err (!%p391_p12)
}
 0x247   :  { %s395_s5 = scalar_lea.hbm %s506_s6, 32 }
 0x248   :  { %p396_p13 = scmp.ne.s32.totalorder %s506_s6, %s395_s5  ;;  %p399_p0 = scmp.lt.u32.totalorder %s395_s5, %s506_s6 }
 0x24a   :  { %p401_p1 = pnand %p399_p0, %p396_p13 }
 0x24c   :  { %404 = shalt.err (!%p401_p1)
}
 0x24d   :  { %298 = dma.vmem_to_hbm [thread:$0]  %s296_s20, 32, %s506_s6, [#allocation4]  }
 0x24e   :  { %407 = dma.done.wait [#allocation4], 32  }
 0x24f   :  { %408 = vsyncadd [#allocation4], 4294967264 }
 0x250   :  { %302 = vsyncpa [#allocation3], 1 }
 0x251   :  { %303 = vsyncpa [#allocation4], 1 }

</bundles_post_ra>
